<compile_context>
chip_gen: v7x
topology: tpu7x:2x2x1
jax: 0.10.0
libtpu: 0.0.40
codegen_flags: <defaults>
</compile_context>

<pallas_src>
import jax
import jax.numpy as jnp
from jax.experimental import pallas as pl
from jax.experimental.pallas import tpu as pltpu

# Tensors smaller than this skip the Pallas path entirely: the fixed
# pallas_call dispatch (~us) plus a full HBM read+write would be ~100% of the
# runtime for them, and SelectProperty needs no data movement at all.
_BYPASS_BYTES = 1 << 20  # 1 MiB


def _dma_copy_kernel(x_hbm_ref, o_hbm_ref, sem):
    # Single whole-array HBM->HBM DMA: never transits vregs or VMEM, one grid
    # step (no 0.35 us/step overhead), works for any shape/dtype.
    copy = pltpu.make_async_copy(x_hbm_ref, o_hbm_ref, sem)
    copy.start()
    copy.wait()


def _pallas_identity(x: jax.Array, *, force_kernel: bool = False) -> jax.Array:
    """Identity on `x`; large (or forced) tensors go through one HBM->HBM DMA."""
    n = x.size
    if n == 0:
        return x
    nbytes = n * jnp.dtype(x.dtype).itemsize
    if not force_kernel and nbytes < _BYPASS_BYTES:
        # Small-tensor bypass: a pure selection needs no kernel at all.
        return x

    return pl.pallas_call(
        _dma_copy_kernel,
        out_shape=jax.ShapeDtypeStruct(x.shape, x.dtype),
        # Keep both operands in HBM (no auto-DMA / no VMEM staging); the
        # kernel body issues the one DMA itself.
        in_specs=[pl.BlockSpec(memory_space=pl.ANY)],
        out_specs=pl.BlockSpec(memory_space=pl.ANY),
        scratch_shapes=[pltpu.SemaphoreType.DMA],  # DMA-completion semaphore
        cost_estimate=pl.CostEstimate(
            flops=0, transcendentals=0, bytes_accessed=2 * nbytes
        ),
    )(x)


class SelectProperty:
    """JAX/Pallas port of the PyTorch SelectProperty module.

    forward(inputs) returns inputs[self.key].  The dict/sequence indexing is
    Python-level glue; the only tensor work is (optionally) materializing a
    copy of the selected tensor via a single HBM->HBM DMA Pallas kernel.
    """

    def __init__(self, key, *, force_pallas_copy: bool = False):
        self.key = key
        self.force_pallas_copy = force_pallas_copy

    def __call__(self, inputs):
        selected = inputs[self.key]  # Python-level selection (glue)
        return _pallas_identity(selected, force_kernel=self.force_pallas_copy)


if __name__ == "__main__":
    key0 = jax.random.PRNGKey(0)
    k_a, k_b = jax.random.split(key0)

    # Small NCHW-shaped feature maps, consistent with a typical conv pipeline.
    inputs = {
        "feat_a": jax.random.normal(k_a, (2, 4, 16, 16), dtype=jnp.float32),
        "feat_b": jax.random.normal(k_b, (2, 8, 8, 8), dtype=jnp.float32),
    }

    # 1) Default (fast) path: small tensor -> bypass, zero kernels launched.
    module = SelectProperty("feat_a")
    out = module(inputs)
    jax.block_until_ready(out)
    assert out.shape == inputs["feat_a"].shape
    assert out.dtype == inputs["feat_a"].dtype
    assert bool(jnp.array_equal(out, inputs["feat_a"]))

    # 2) Forced Pallas path: exercise the HBM->HBM DMA kernel once on TPU.
    module_forced = SelectProperty("feat_a", force_pallas_copy=True)
    out_k = module_forced(inputs)
    jax.block_until_ready(out_k)
    assert out_k.shape == inputs["feat_a"].shape
    assert out_k.dtype == inputs["feat_a"].dtype
    assert bool(jnp.array_equal(out_k, inputs["feat_a"]))

    print("KERNEL_OK")
</pallas_src>

<mosaic_0001>
module attributes {stable_mosaic.version = 11 : i64} {
  func.func @_dma_copy_kernel(%arg0: memref<2x4x16x16xf32, #tpu.memory_space<any>>, %arg1: memref<2x4x16x16xf32, #tpu.memory_space<any>>, %arg2: memref<!tpu.dma_semaphore, #tpu.memory_space<semaphore_mem>>) attributes {dimension_semantics = [], scalar_prefetch = 0 : i64, scratch_operands = 1 : i64, tpu.core_type = #tpu.core_type<tc>} {
    tpu.enqueue_dma source(%arg0 : memref<2x4x16x16xf32, #tpu.memory_space<any>>) target(%arg1 : memref<2x4x16x16xf32, #tpu.memory_space<any>>) target_semaphore(%arg2 : memref<!tpu.dma_semaphore, #tpu.memory_space<semaphore_mem>>)
    tpu.wait_dma2 semaphore(%arg2 : memref<!tpu.dma_semaphore, #tpu.memory_space<semaphore_mem>>) src(%arg0 : memref<2x4x16x16xf32, #tpu.memory_space<any>>) dst(%arg1 : memref<2x4x16x16xf32, #tpu.memory_space<any>>)
    return
  }
}

</mosaic_0001>

<bundles_post_ra>
// kernel: tpu_custom_call.1
= control target key start
LH: loop header
LB: loop body
LE: loop exit
PB: predicated region body
PF: predicated region fallthrough
CT: control target
= control target key end

     0   :  { %s36_s6 = smov [#allocation2]   ;;  %s37_s7 = smov [#allocation3]   ;;  %s55_s0 = inlined_call_operand.hbm [shape: f32[2,4,16,16], index: 0, kind: input, shape index: {}]   ;;  %s56_s1 = inlined_call_operand.hbm [shape: f32[2,4,16,16], index: 1, kind: output, shape index: {}]  }
   0x1   :  { %s38_s8 = smov 0  }
   0x2   :  { %18 = dma.general %s55_s0, 2048, %s56_s1, %s36_s6, %s37_s7, [#allocation4], %s38_s8, 0  }
   0x3   :  { %34 = dma.done.wait [#allocation2], 2048 }
   0x4   :  { %35 = vsyncadd [#allocation2], 4294965248 }
   0x5   :  { %24 = vsyncmov [#allocation2] }
   0x8   :  { %s25_s13 = vpop.sfrf %24 }
   0x9   :  { %p30_p0 = scmp.ne.s32.totalorder %s25_s13, 0 }
   0xb   :  { %29 = shalt.err (%p30_p0)  }

</bundles_post_ra>
